<compile_context>
chip_gen: v7x
topology: tpu7x:2x2x1
jax: 0.10.0
libtpu: 0.0.40
codegen_flags: <defaults>
</compile_context>

<pallas_src>
import functools

import jax
import jax.numpy as jnp
from jax.experimental import pallas as pl
from jax.experimental.pallas import tpu as pltpu

KSIZE = 3          # kernel_size
STRIDE = 1         # stride
PAD = 1            # padding
BN_EPS = 1e-5

_VMEM_BUDGET = 40 * 1024 * 1024   # per-step working-set target (fits v7x's 64 MiB/TC)
_VMEM_LIMIT = 64 * 1024 * 1024    # scoped VMEM limit (> 16/32 MiB defaults, <= v7x physical)
_TINY_CIN = 8                     # stem layers keep the single-dot im2col path


# ---------------------------------------------------------------------------
# Kernels
# ---------------------------------------------------------------------------
def _im2col_kernel(lhs_ref, w_ref, scale_ref, shift_ref, o_ref):
    """Tiny-Cin path: one MXU dot over the im2col patch tile + BN/ReLU epilogue.

    lhs_ref:   (TM, K_pad)    bf16  im2col patches (K_pad = round_up(9*Cin, 128))
    w_ref:     (K_pad, Cout)  bf16  raw conv weights (zero-padded rows)
    scale_ref: (1, Cout)      f32   gamma / sqrt(var + eps)
    shift_ref: (1, Cout)      f32   beta - mean * scale
    o_ref:     (TM, Cout)     f32   only the real Cout columns are stored
    """
    acc = jnp.dot(lhs_ref[...], w_ref[...], preferred_element_type=jnp.float32)
    o_ref[...] = jnp.maximum(acc * scale_ref[...] + shift_ref[...],
                             0.0).astype(o_ref.dtype)


def _direct_conv_kernel(x_ref, w_ref, scale_ref, shift_ref, o_ref,
                        *, th, wp2, cin, cout):
    """General path: direct 3x3 conv on one row-tile, input read from HBM once.

    x_ref:     (flat_rows, Cin)  bf16  whole zero-padded image, (h, w) flattened
                                       row-major with row stride wp2 (wp2 % 8 == 0)
    w_ref:     (9, Cin, Cout)    bf16  taps ordered (kh, kw)
    scale_ref: (1, Cout)         f32
    shift_ref: (1, Cout)         f32
    o_ref:     (TH*wp2, Cout)    f32   flattened output rows (cols >= W are junk,
                                       stripped in the wrapper)
    """
    rows = th * wp2
    r0 = pl.program_id(1) * th
    acc = jnp.zeros((rows, cout), jnp.float32)
    for kh in range(KSIZE):
        # One 8-aligned slab per kh (dynamic start; wp2 is a multiple of 8).
        base = pl.multiple_of((r0 + kh) * wp2, 8)
        slab = x_ref[pl.ds(base, rows + 8), :]
        for kw in range(KSIZE):
            patch = slab[kw:kw + rows, :]          # static sub-row shift for kw
            acc = acc + jnp.dot(patch, w_ref[kh * KSIZE + kw],
                                preferred_element_type=jnp.float32)
    o_ref[...] = jnp.maximum(acc * scale_ref[...] + shift_ref[...],
                             0.0).astype(o_ref.dtype)


# ---------------------------------------------------------------------------
# Small helpers
# ---------------------------------------------------------------------------
def _const_spec(block_shape, index_map, single_buffer):
    """BlockSpec for a grid-invariant operand; single-buffer when supported."""
    if single_buffer:
        return pl.BlockSpec(block_shape, index_map, pipeline_mode=pl.Buffered(1))
    return pl.BlockSpec(block_shape, index_map)


def _call_fused(build, *args):
    """Run the kernel; fall back to default (double) buffering of the
    grid-invariant operands if this Pallas build rejects pl.Buffered(1)."""
    try:
        return build(True)(*args)
    except Exception:  # pragma: no cover - depends on jax/libtpu build
        return build(False)(*args)


def _pick_tm(m, k_pad, cout, budget=_VMEM_BUDGET):
    """VMEM/dtype-aware M tile for the im2col path (prefers >= 4 grid steps)."""
    def fits(tm):
        vmem = (2 * tm * k_pad * 2        # lhs bf16, double-buffered
                + k_pad * cout * 2        # weights bf16 (single-buffered)
                + 4 * cout * 4            # BN scale + shift
                + 2 * tm * cout * 4)      # f32 output tile, double-buffered
        return vmem <= budget
    for min_steps in (4, 2):
        for tm in (2048, 1024, 512, 256, 128):
            if fits(tm) and pl.cdiv(m, tm) >= min_steps:
                return tm
    for tm in (128, 256, 512, 1024, 2048):   # tiny problems / tight budgets
        if fits(tm):
            return tm
    return 128  # TODO(synk): add a Cout grid dimension if even TM=128 overflows.


def _pick_th(n, h, wp2, cin, cout, budget=_VMEM_BUDGET):
    """VMEM-aware row tile for the direct path (prefers >= 4 grid steps)."""
    flat_rows = (h + 2) * wp2 + 8
    def fits(th):
        rows = th * wp2
        vmem = (2 * flat_rows * cin * 2      # padded image block, double-buffered
                + 9 * cin * cout * 2         # weights (single-buffered)
                + 4 * cout * 4               # BN scale + shift
                + 2 * rows * cout * 4        # f32 output tile, double-buffered
                + 2 * (rows + 8) * cin * 2   # kh slab + shifted copy
                + rows * cout * 4)           # f32 accumulator
        return vmem <= budget
    divisors = sorted((d for d in range(1, h + 1) if h % d == 0), reverse=True)
    for th in divisors:
        if fits(th) and n * (h // th) >= 4:
            return th
    for th in divisors:
        if fits(th):
            return th
    # TODO(synk): images whose padded plane alone exceeds the VMEM budget need a
    # manual haloed-row DMA (pl.ANY input + pltpu.make_async_copy); the caller
    # falls back to the tiled im2col path for now.
    return divisors[-1]


# ---------------------------------------------------------------------------
# Path 1: tiny Cin (stem layers) — single im2col MXU dot
# ---------------------------------------------------------------------------
def _conv_im2col(x_nhwc, w_oihw, scale, shift):
    n, h, w, cin = x_nhwc.shape
    cout = w_oihw.shape[0]
    k = KSIZE * KSIZE * cin
    k_pad = ((k + 127) // 128) * 128          # dense lhs lane layout for the MXU
    m = n * h * w

    tm = _pick_tm(m, k_pad, cout)
    num_tiles = pl.cdiv(m, tm)
    if num_tiles > 1 and num_tiles % 2:
        num_tiles += 1                         # even grid -> balanced megacore split
    m_pad = num_tiles * tm

    x_p = jnp.pad(x_nhwc, ((0, 0), (PAD, PAD), (PAD, PAD), (0, 0)))
    taps = [x_p[:, kh:kh + h, kw:kw + w, :]
            for kh in range(KSIZE) for kw in range(KSIZE)]
    lhs = jnp.concatenate(taps, axis=-1).reshape(m, k)
    lhs = jnp.pad(lhs, ((0, m_pad - m), (0, k_pad - k))).astype(jnp.bfloat16)

    w_mat = jnp.transpose(w_oihw, (2, 3, 1, 0)).reshape(k, cout)
    w_mat = jnp.pad(w_mat, ((0, k_pad - k), (0, 0))).astype(jnp.bfloat16)
    scale2 = scale.reshape(1, cout).astype(jnp.float32)
    shift2 = shift.reshape(1, cout).astype(jnp.float32)

    cost = pl.CostEstimate(
        flops=2 * m_pad * k_pad * cout,
        transcendentals=0,
        bytes_accessed=int(m_pad * k_pad * 2 + k_pad * cout * 2 + m_pad * cout * 4))

    def build(single_buffer):
        return pl.pallas_call(
            _im2col_kernel,
            out_shape=jax.ShapeDtypeStruct((m_pad, cout), jnp.float32),
            grid_spec=pltpu.PrefetchScalarGridSpec(
                num_scalar_prefetch=0,
                grid=(num_tiles,),
                in_specs=[
                    pl.BlockSpec((tm, k_pad), lambda i: (i, 0)),
                    _const_spec((k_pad, cout), lambda i: (0, 0), single_buffer),
                    _const_spec((1, cout), lambda i: (0, 0), single_buffer),
                    _const_spec((1, cout), lambda i: (0, 0), single_buffer),
                ],
                out_specs=pl.BlockSpec((tm, cout), lambda i: (i, 0)),
            ),
            compiler_params=pltpu.CompilerParams(
                dimension_semantics=("parallel",),
                vmem_limit_bytes=_VMEM_LIMIT),
            cost_estimate=cost,
        )

    out_flat = _call_fused(build, lhs, w_mat, scale2, shift2)
    return out_flat[:m].reshape(n, h, w, cout)


# ---------------------------------------------------------------------------
# Path 2: Cin > 8 — direct in-kernel conv (input read from HBM once)
# ---------------------------------------------------------------------------
def _conv_direct(x_nhwc, w_oihw, scale, shift):
    n, h, w, cin = x_nhwc.shape
    cout = w_oihw.shape[0]
    wp2 = ((w + 2 + 7) // 8) * 8               # padded row width, multiple of 8
    flat_rows = (h + 2) * wp2 + 8              # +8 rows of slack for the kh/kw slabs
    th = _pick_th(n, h, wp2, cin, cout)
    rows = th * wp2

    # Zero-pad spatially (conv pad + width alignment) and flatten (h, w) row-major.
    x_p = jnp.pad(x_nhwc, ((0, 0), (PAD, PAD), (PAD, wp2 - w - PAD), (0, 0)))
    x_flat = x_p.reshape(n, (h + 2) * wp2, cin)
    x_flat = jnp.pad(x_flat, ((0, 0), (0, flat_rows - (h + 2) * wp2), (0, 0)))
    x_flat = x_flat.astype(jnp.bfloat16)

    w9 = jnp.transpose(w_oihw, (2, 3, 1, 0)).reshape(KSIZE * KSIZE, cin, cout)
    w9 = w9.astype(jnp.bfloat16)
    scale2 = scale.reshape(1, cout).astype(jnp.float32)
    shift2 = shift.reshape(1, cout).astype(jnp.float32)

    kernel = functools.partial(_direct_conv_kernel,
                               th=th, wp2=wp2, cin=cin, cout=cout)
    cost = pl.CostEstimate(
        flops=2 * n * h * w * KSIZE * KSIZE * cin * cout,
        transcendentals=0,
        bytes_accessed=int(n * flat_rows * cin * 2 + 9 * cin * cout * 2
                           + n * h * wp2 * cout * 4))

    def build(single_buffer):
        return pl.pallas_call(
            kernel,
            out_shape=jax.ShapeDtypeStruct((n, h * wp2, cout), jnp.float32),
            grid_spec=pltpu.PrefetchScalarGridSpec(
                num_scalar_prefetch=0,
                grid=(n, h // th),
                in_specs=[
                    pl.BlockSpec((None, flat_rows, cin), lambda b, i: (b, 0, 0)),
                    _const_spec((KSIZE * KSIZE, cin, cout),
                                lambda b, i: (0, 0, 0), single_buffer),
                    _const_spec((1, cout), lambda b, i: (0, 0), single_buffer),
                    _const_spec((1, cout), lambda b, i: (0, 0), single_buffer),
                ],
                out_specs=pl.BlockSpec((None, rows, cout), lambda b, i: (b, i, 0)),
            ),
            compiler_params=pltpu.CompilerParams(
                dimension_semantics=("parallel", "parallel"),
                vmem_limit_bytes=_VMEM_LIMIT),
            cost_estimate=cost,
        )

    out_flat = _call_fused(build, x_flat, w9, scale2, shift2)
    # Strip the alignment-junk columns (~(wp2-w)/w extra, a small wrapper pass).
    return out_flat.reshape(n, h, wp2, cout)[:, :, :w, :]


# ---------------------------------------------------------------------------
# Public forward pass
# ---------------------------------------------------------------------------
def conv2d_norm_relu(x_nchw, weight_oihw, gamma, beta, running_mean,
                     running_var, eps=BN_EPS):
    """Conv2d(3x3, s1, p1, no bias) -> BatchNorm2d (eval stats) -> ReLU.

    x_nchw:       (N, Cin, H, W)    float32   (PyTorch layout)
    weight_oihw:  (Cout, Cin, 3, 3) float32   (PyTorch Conv2d weight layout)
    returns:      (N, Cout, H, W)   float32
    """
    cin = x_nchw.shape[1]
    # BN (eval) as a per-channel scale/shift applied on the f32 accumulator
    # (NOT folded into the bf16 weights, avoiding compounded quantization error).
    scale = gamma / jnp.sqrt(running_var + eps)
    shift = beta - running_mean * scale

    x_nhwc = jnp.transpose(x_nchw, (0, 2, 3, 1))
    if cin <= _TINY_CIN:
        out_nhwc = _conv_im2col(x_nhwc, weight_oihw, scale, shift)
    else:
        try:
            out_nhwc = _conv_direct(x_nhwc, weight_oihw, scale, shift)
        except Exception:  # pragma: no cover - lowering unsupported on this build
            # TODO(synk): drop this fallback once the direct path is known-good
            # on every Mosaic build; the tiled im2col path is always available.
            out_nhwc = _conv_im2col(x_nhwc, weight_oihw, scale, shift)
    # TODO(synk): drop this NCHW transpose if the downstream consumer takes NHWC.
    return jnp.transpose(out_nhwc, (0, 3, 1, 2))


def _reference(x_nchw, weight_oihw, gamma, beta, running_mean, running_var,
               eps=BN_EPS):
    """Pure-JAX f32 reference (lax conv, NCHW) for correctness checking."""
    y = jax.lax.conv_general_dilated(
        x_nchw, weight_oihw,
        window_strides=(STRIDE, STRIDE),
        padding=((PAD, PAD), (PAD, PAD)),
        dimension_numbers=("NCHW", "OIHW", "NCHW"),
    )
    scale = (gamma / jnp.sqrt(running_var + eps)).reshape(1, -1, 1, 1)
    shift = (beta - running_mean * gamma / jnp.sqrt(running_var + eps)
             ).reshape(1, -1, 1, 1)
    return jnp.maximum(y * scale + shift, 0.0)


if __name__ == "__main__":
    def _check(key, n, cin, h, w, cout):
        ks = jax.random.split(key, 6)
        x = jax.random.normal(ks[0], (n, cin, h, w), jnp.float32)
        weight = jax.random.normal(ks[1], (cout, cin, KSIZE, KSIZE),
                                   jnp.float32) * 0.1
        gamma = 1.0 + 0.2 * jax.random.normal(ks[2], (cout,), jnp.float32)
        beta = 0.1 * jax.random.normal(ks[3], (cout,), jnp.float32)
        mean = 0.1 * jax.random.normal(ks[4], (cout,), jnp.float32)
        var = 1.0 + 0.5 * jax.random.uniform(ks[5], (cout,), jnp.float32)

        out = jax.block_until_ready(
            conv2d_norm_relu(x, weight, gamma, beta, mean, var))
        ref = _reference(x, weight, gamma, beta, mean, var)
        assert out.shape == (n, cout, h, w), out.shape
        err = float(jnp.max(jnp.abs(out - ref)))
        # bf16 MXU inputs with f32 accumulation -> relaxed tolerance vs f32 ref.
        assert jnp.allclose(out, ref, atol=5e-2, rtol=5e-2), (
            f"mismatch vs reference; max abs err = {err}")

    root = jax.random.PRNGKey(0)
    k1, k2 = jax.random.split(root)
    # Tiny-Cin stem layer (the spec's shapes) -> single-dot im2col path.
    _check(k1, n=2, cin=4, h=16, w=16, cout=8)
    # Cin > 8 -> direct in-kernel conv path (input read from HBM once).
    _check(k2, n=2, cin=16, h=16, w=16, cout=16)
    print("KERNEL_OK")
</pallas_src>

<mosaic_0001>
module attributes {stable_mosaic.version = 11 : i64} {
  func.func @_im2col_kernel(%arg0: i32, %arg1: memref<128x128xbf16, #tpu.memory_space<vmem>>, %arg2: memref<128x8xbf16, #tpu.memory_space<vmem>>, %arg3: memref<1x8xf32, #tpu.memory_space<vmem>>, %arg4: memref<1x8xf32, #tpu.memory_space<vmem>>, %arg5: memref<128x8xf32, #tpu.memory_space<vmem>>) attributes {dimension_semantics = [#tpu.dimension_semantics<parallel>], iteration_bounds = array<i64: 4>, scalar_prefetch = 0 : i64, scratch_operands = 0 : i64, tpu.core_type = #tpu.core_type<tc>, window_params = [{transform_indices = @transform_0, window_bounds = array<i64: 128, 128>}, {pipeline_mode = #tpu.pipeline_mode<synchronous>, transform_indices = @transform_1, window_bounds = array<i64: 128, 8>}, {pipeline_mode = #tpu.pipeline_mode<synchronous>, transform_indices = @transform_2, window_bounds = array<i64: 1, 8>}, {pipeline_mode = #tpu.pipeline_mode<synchronous>, transform_indices = @transform_3, window_bounds = array<i64: 1, 8>}, {transform_indices = @transform_4, window_bounds = array<i64: 128, 8>}]} {
    %c0 = arith.constant 0 : index
    %c0_0 = arith.constant 0 : index
    %0 = vector.load %arg1[%c0, %c0_0] : memref<128x128xbf16, #tpu.memory_space<vmem>>, vector<128x128xbf16>
    %c0_1 = arith.constant 0 : index
    %c0_2 = arith.constant 0 : index
    %1 = vector.load %arg2[%c0_1, %c0_2] : memref<128x8xbf16, #tpu.memory_space<vmem>>, vector<128x8xbf16>
    %cst = arith.constant dense<0.000000e+00> : vector<128x8xf32>
    %2 = tpu.matmul %0, %1, %cst {dimension_numbers = #tpu.dot_dimension_numbers<[1], [0], [0], [1], [0, 0, 1, 1], [], []>} : vector<128x128xbf16>, vector<128x8xbf16>, vector<128x8xf32> -> vector<128x8xf32>
    %c0_3 = arith.constant 0 : index
    %c0_4 = arith.constant 0 : index
    %3 = vector.load %arg3[%c0_3, %c0_4] : memref<1x8xf32, #tpu.memory_space<vmem>>, vector<1x8xf32>
    %4 = vector.broadcast %3 : vector<1x8xf32> to vector<128x8xf32>
    %5 = arith.mulf %2, %4 : vector<128x8xf32>
    %c0_5 = arith.constant 0 : index
    %c0_6 = arith.constant 0 : index
    %6 = vector.load %arg4[%c0_5, %c0_6] : memref<1x8xf32, #tpu.memory_space<vmem>>, vector<1x8xf32>
    %7 = vector.broadcast %6 : vector<1x8xf32> to vector<128x8xf32>
    %8 = arith.addf %5, %7 : vector<128x8xf32>
    %cst_7 = arith.constant 0.000000e+00 : f32
    %9 = vector.broadcast %cst_7 : f32 to vector<128x8xf32>
    %10 = arith.maximumf %8, %9 : vector<128x8xf32>
    %c0_8 = arith.constant 0 : index
    %c0_9 = arith.constant 0 : index
    %11 = vector.load %arg5[%c0_8, %c0_9] : memref<128x8xf32, #tpu.memory_space<vmem>>, vector<128x8xf32>
    tpu.vector_store %arg5[%c0_8, %c0_9], %10 {strides = array<i32>} : memref<128x8xf32, #tpu.memory_space<vmem>>, vector<128x8xf32>,
    return
  }
  func.func @transform_0(%arg0: i32) -> (i32, i32) {
    %c0_i32 = arith.constant 0 : i32
    %c0_i32_0 = arith.constant 0 : i32
    return %arg0, %c0_i32 : i32, i32
  }
  func.func @transform_1(%arg0: i32) -> (i32, i32) {
    %c0_i32 = arith.constant 0 : i32
    %c0_i32_0 = arith.constant 0 : i32
    %c0_i32_1 = arith.constant 0 : i32
    return %c0_i32, %c0_i32_0 : i32, i32
  }
  func.func @transform_2(%arg0: i32) -> (i32, i32) {
    %c0_i32 = arith.constant 0 : i32
    %c0_i32_0 = arith.constant 0 : i32
    %c0_i32_1 = arith.constant 0 : i32
    return %c0_i32, %c0_i32_0 : i32, i32
  }
  func.func @transform_3(%arg0: i32) -> (i32, i32) {
    %c0_i32 = arith.constant 0 : i32
    %c0_i32_0 = arith.constant 0 : i32
    %c0_i32_1 = arith.constant 0 : i32
    return %c0_i32, %c0_i32_0 : i32, i32
  }
  func.func @transform_4(%arg0: i32) -> (i32, i32) {
    %c0_i32 = arith.constant 0 : i32
    %c0_i32_0 = arith.constant 0 : i32
    return %arg0, %c0_i32 : i32, i32
  }
}

module attributes {stable_mosaic.version = 11 : i64} {
  func.func @_im2col_kernel(%arg0: i32, %arg1: memref<128x128xbf16, #tpu.memory_space<vmem>>, %arg2: memref<128x8xbf16, #tpu.memory_space<vmem>>, %arg3: memref<1x8xf32, #tpu.memory_space<vmem>>, %arg4: memref<1x8xf32, #tpu.memory_space<vmem>>, %arg5: memref<128x8xf32, #tpu.memory_space<vmem>>) attributes {dimension_semantics = [#tpu.dimension_semantics<parallel>], iteration_bounds = array<i64: 4>, scalar_prefetch = 0 : i64, scratch_operands = 0 : i64, tpu.core_type = #tpu.core_type<tc>, window_params = [{transform_indices = @transform_0, window_bounds = array<i64: 128, 128>}, {pipeline_mode = #tpu.pipeline_mode<synchronous>, transform_indices = @transform_1, window_bounds = array<i64: 128, 8>}, {pipeline_mode = #tpu.pipeline_mode<synchronous>, transform_indices = @transform_2, window_bounds = array<i64: 1, 8>}, {pipeline_mode = #tpu.pipeline_mode<synchronous>, transform_indices = @transform_3, window_bounds = array<i64: 1, 8>}, {transform_indices = @transform_4, window_bounds = array<i64: 128, 8>}]} {
    %c0 = arith.constant 0 : index
    %c0_0 = arith.constant 0 : index
    %0 = vector.load %arg1[%c0, %c0_0] : memref<128x128xbf16, #tpu.memory_space<vmem>>, vector<128x128xbf16>
    %c0_1 = arith.constant 0 : index
    %c0_2 = arith.constant 0 : index
    %1 = vector.load %arg2[%c0_1, %c0_2] : memref<128x8xbf16, #tpu.memory_space<vmem>>, vector<128x8xbf16>
    %cst = arith.constant dense<0.000000e+00> : vector<128x8xf32>
    %2 = tpu.matmul %0, %1, %cst {dimension_numbers = #tpu.dot_dimension_numbers<[1], [0], [0], [1], [0, 0, 1, 1], [], []>} : vector<128x128xbf16>, vector<128x8xbf16>, vector<128x8xf32> -> vector<128x8xf32>
    %c0_3 = arith.constant 0 : index
    %c0_4 = arith.constant 0 : index
    %3 = vector.load %arg3[%c0_3, %c0_4] : memref<1x8xf32, #tpu.memory_space<vmem>>, vector<1x8xf32>
    %4 = vector.broadcast %3 : vector<1x8xf32> to vector<128x8xf32>
    %5 = arith.mulf %2, %4 : vector<128x8xf32>
    %c0_5 = arith.constant 0 : index
    %c0_6 = arith.constant 0 : index
    %6 = vector.load %arg4[%c0_5, %c0_6] : memref<1x8xf32, #tpu.memory_space<vmem>>, vector<1x8xf32>
    %7 = vector.broadcast %6 : vector<1x8xf32> to vector<128x8xf32>
    %8 = arith.addf %5, %7 : vector<128x8xf32>
    %cst_7 = arith.constant 0.000000e+00 : f32
    %9 = vector.broadcast %cst_7 : f32 to vector<128x8xf32>
    %10 = arith.maximumf %8, %9 : vector<128x8xf32>
    %c0_8 = arith.constant 0 : index
    %c0_9 = arith.constant 0 : index
    %11 = vector.load %arg5[%c0_8, %c0_9] : memref<128x8xf32, #tpu.memory_space<vmem>>, vector<128x8xf32>
    tpu.vector_store %arg5[%c0_8, %c0_9], %10 {strides = array<i32>} : memref<128x8xf32, #tpu.memory_space<vmem>>, vector<128x8xf32>,
    return
  }
  func.func @transform_0(%arg0: i32) -> (i32, i32) {
    %c0_i32 = arith.constant 0 : i32
    %c0_i32_0 = arith.constant 0 : i32
    return %arg0, %c0_i32 : i32, i32
  }
  func.func @transform_1(%arg0: i32) -> (i32, i32) {
    %c0_i32 = arith.constant 0 : i32
    %c0_i32_0 = arith.constant 0 : i32
    %c0_i32_1 = arith.constant 0 : i32
    return %c0_i32, %c0_i32_0 : i32, i32
  }
  func.func @transform_2(%arg0: i32) -> (i32, i32) {
    %c0_i32 = arith.constant 0 : i32
    %c0_i32_0 = arith.constant 0 : i32
    %c0_i32_1 = arith.constant 0 : i32
    return %c0_i32, %c0_i32_0 : i32, i32
  }
  func.func @transform_3(%arg0: i32) -> (i32, i32) {
    %c0_i32 = arith.constant 0 : i32
    %c0_i32_0 = arith.constant 0 : i32
    %c0_i32_1 = arith.constant 0 : i32
    return %c0_i32, %c0_i32_0 : i32, i32
  }
  func.func @transform_4(%arg0: i32) -> (i32, i32) {
    %c0_i32 = arith.constant 0 : i32
    %c0_i32_0 = arith.constant 0 : i32
    return %arg0, %c0_i32 : i32, i32
  }
}

</mosaic_0001>

<bundles_post_ra>
// kernel: tpu_custom_call.1
= control target key start
LH: loop header
LB: loop body
LE: loop exit
PB: predicated region body
PF: predicated region fallthrough
CT: control target
= control target key end

     0   :  { %9 = vsyncpa [#allocation3], 0  ;;  %s1450_s0 = inlined_call_operand.hbm [shape: bf16[512,128], index: 0, kind: input, shape index: {}]   ;;  %s1451_s1 = inlined_call_operand.hbm [shape: bf16[128,8], index: 1, kind: input, shape index: {}]   ;;  %s1452_s2 = inlined_call_operand.hbm [shape: f32[1,8], index: 2, kind: input, shape index: {}]   ;;  %s1453_s3 = inlined_call_operand.hbm [shape: f32[1,8], index: 3, kind: input, shape index: {}]   ;;  %s1454_s4 = inlined_call_operand.hbm [shape: f32[512,8], index: 4, kind: output, shape index: {}]  }
   0x1   :  { %11 = vsyncpa [#allocation3 + $0x1], 0 }
   0x2   :  { %12 = vsyncpa [#allocation6], 0 }
   0x3   :  { %13 = vsyncpa [#allocation9], 0 }
   0x4   :  { %14 = vsyncpa [#allocation4], 0 }
   0x5   :  { %16 = vsyncpa [#allocation4 + $0x1], 0  ;;  %s1104_s15 = smov 0   ;;  %s1106_s16 = smov 0  }
   0x6   :  { %s1108_s17 = smov 0   ;;  %s1110_s18 = smov 0  }
   0x7 LB: > { %s1125_s19 = sadd.s32 4294967295, %s1068_s18   ;;  %s679_s20 = sadd.s32 4294967294, %s1068_s18   ;;  %s1068_s18 = sphi %s1110_s18, %s1476_s18   ;;  %s1064_s17 = sphi %s1108_s17, %s1475_s17   ;;  %s1060_s16 = sphi %s1106_s16, %s1474_s16   ;;  %s1056_s15 = sphi %s1104_s15, %s1473_s15  }
   0x8   : > { %p42_p0 = scmp.ne.s32.totalorder %s1060_s16, %s1056_s15  ;;  %p1455_p1 = scmp.eq.s32.totalorder %s1125_s19, 0 }
   0x9   : > { %p135_p3 = scmp.eq.s32.totalorder %s679_s20, 3  ;;  %p680_p5 = scmp.ge.s32.totalorder %s1068_s18, 1 }
   0xa   : > { %p1134_p4 = por %p1455_p1, %p42_p0  ;;  %p142_p7 = scmp.lt.s32.totalorder %s1068_s18, 5 }
   0xb   : > { %p1139_p6 = por %p135_p3, %p42_p0  ;;  %s1070_s24 = smov [#allocation5]  }
   0xc   : > { %s1458_s21 = scalar_select %p1134_p4, 1, 0 }
   0xd   : > { %s1459_s22 = scalar_select %p1139_p6, 1, 0 }
   0xe   : > { %p1144_p8 = pnand %p680_p5, %p142_p7  ;;  %s154_s25 = sshll.u32 %s1070_s24, 4  ;;  %s1148_s25 = int_to_ptr.vmem [resolvable:$true] %s154_s25 }
   0xf   : > { %s1071_s27 = smov [#allocation7]   ;;  %s1072_s29 = smov [#allocation8]  }
  0x10   : > { %s1460_s23 = scalar_select %p1144_p8, 1, 0 }
  0x11   : > { %p799_p9 = pneg %p1144_p8  ;;  %s168_s28 = sshll.u32 %s1071_s27, 4  ;;  %s1158_s28 = int_to_ptr.vmem [resolvable:$true] %s168_s28 }
  0x12   : > { %s1160_s30 = sshll.u32 %s1072_s29, 4  ;;  %s880_s7 = scalar_lea.hbm %s1451_s1, 1024  ;;  %s180_s30 = int_to_ptr.vmem [resolvable:$true] %s1160_s30 }
  0x13   : > { %p1154_p10 = pnand %p799_p9, %p1455_p1  ;;  %p881_p11 = scmp.ne.s32.totalorder %s1451_s1, %s880_s7 }
  0x14   : > { %p887_p3 = scmp.lt.u32.totalorder %s880_s7, %s1451_s1 }
  0x15   : > { %p1170_p12 = pneg %p1154_p10 }
  0x17   : > { %p883_p13 = pnand %p1170_p12, %p881_p11 }
  0x19   : > { %p884_p0 = pneg %p883_p13 }
  0x1b   : > { %p889_p5 = pnand %p887_p3, %p884_p0 }
  0x1d   : > { %892 = shalt.err (!%p889_p5)
}
  0x1e   : > { %s893_s13 = scalar_lea.vmem %s1148_s25, 1024  ;;  %p901_p2 = scmp.lt.s32.totalorder %s1148_s25, %s1148_s25 }
  0x1f   : > { %p894_p7 = scmp.ne.s32.totalorder %s1148_s25, %s893_s13  ;;  %p902_p6 = scmp.lt.s32.totalorder %s893_s13, %s893_s13 }
  0x21   : > { %p896_p9 = pnand %p894_p7, %p1170_p12  ;;  %p903_p11 = por %p902_p6, %p901_p2 }
  0x23   : > { %p897_p1 = pneg %p896_p9 }
  0x25   : > { %p904_p13 = pnand %p903_p11, %p897_p1 }
  0x27   : > { %907 = shalt.err (!%p904_p13)
}
  0x28   : > { %s1073_s14 = smov 64   ;;  %s1074_s20 = smov 4  }
  0x29   : > { %802 = dma.hbm_to_vmem [thread:$0]  (!%p1154_p10), %s1451_s1, 1024, %s1148_s25, [#allocation6], %s1073_s14, %s1073_s14, %s1074_s20  }
  0x2a   : > { %s908_s6 = scalar_lea.hbm %s1452_s2, 16 }
  0x2b   : > { %p909_p1 = scmp.ne.s32.totalorder %s1452_s2, %s908_s6  ;;  %p915_p0 = scmp.lt.u32.totalorder %s908_s6, %s1452_s2 }
  0x2d   : > { %p911_p2 = pnand %p909_p1, %p1170_p12 }
  0x2f   : > { %p912_p6 = pneg %p911_p2 }
  0x31   : > { %p917_p3 = pnand %p915_p0, %p912_p6 }
  0x33   : > { %920 = shalt.err (!%p917_p3)
}
  0x34   : > { %s921_s25 = scalar_lea.vmem %s1158_s28, 16  ;;  %s928_s12 = scalar_lea.vmem %s1158_s28, 32 }
  0x35   : > { %p922_p5 = scmp.ne.s32.totalorder %s1158_s28, %s921_s25  ;;  %p929_p11 = scmp.lt.s32.totalorder %s1158_s28, %s1158_s28 }
  0x36   : > { %p930_p13 = scmp.lt.s32.totalorder %s928_s12, %s921_s25 }
  0x37   : > { %p924_p7 = pnand %p922_p5, %p1170_p12 }
  0x38   : > { %p931_p1 = por %p930_p13, %p929_p11 }
  0x39   : > { %p925_p9 = pneg %p924_p7 }
  0x3b   : > { %p932_p2 = pnand %p931_p1, %p925_p9 }
  0x3d   : > { %935 = shalt.err (!%p932_p2)
}
  0x3e   : > { %805 = dma.hbm_to_vmem [thread:$0]  (!%p1154_p10), %s1452_s2, 16, %s1158_s28, [#allocation6]  }
  0x3f   : > { %s936_s5 = scalar_lea.hbm %s1453_s3, 16 }
  0x40   : > { %p937_p6 = scmp.ne.s32.totalorder %s1453_s3, %s936_s5  ;;  %p943_p5 = scmp.lt.u32.totalorder %s936_s5, %s1453_s3 }
  0x42   : > { %p939_p0 = pnand %p937_p6, %p1170_p12 }
  0x44   : > { %p940_p3 = pneg %p939_p0 }
  0x46   : > { %p945_p7 = pnand %p943_p5, %p940_p3 }
  0x48   : > { %948 = shalt.err (!%p945_p7)
}
  0x49   : > { %s949_s11 = scalar_lea.vmem %s180_s30, 16  ;;  %s956_s28 = scalar_lea.vmem %s180_s30, 32 }
  0x4a   : > { %p950_p9 = scmp.ne.s32.totalorder %s180_s30, %s949_s11  ;;  %p957_p1 = scmp.lt.s32.totalorder %s180_s30, %s180_s30 }
  0x4b   : > { %p958_p2 = scmp.lt.s32.totalorder %s956_s28, %s949_s11 }
  0x4c   : > { %p952_p11 = pnand %p950_p9, %p1170_p12 }
  0x4d   : > { %p959_p4 = por %p958_p2, %p957_p1 }
  0x4e   : > { %p953_p13 = pneg %p952_p11 }
  0x50   : > { %p960_p8 = pnand %p959_p4, %p953_p13 }
  0x52   : > { %963 = shalt.err (!%p960_p8)
}
  0x53   : > { %808 = dma.hbm_to_vmem [thread:$0]  (!%p1154_p10), %s1453_s3, 16, %s180_s30, [#allocation9]  }
  0x54   : > { %s1238_s10 = sadd.s32 1, %s1068_s18   ;;  %s29_s26 = sadd.s32 1, %s1064_s17 }
  0x55   : > { %s26_s13 = ssub.s32 %s1068_s18, %s1238_s10  ;;  %p36_p8 = scmp.ne.s32.totalorder %s1064_s17, %s1060_s16 }
  0x56   : > { %p27_p4 = scmp.eq.s32.totalorder %s26_s13, 0  ;;  %p37_p12 = scmp.eq.s32.totalorder %s1068_s18, 0 }
  0x57   : > { %p820_p6 = scmp.lt.s32.totalorder %s1068_s18, 4  ;;  %p1463_p3 = scmp.eq.s32.totalorder %s1125_s19, 3 }
  0x58   : > { %s1248_s24 = scalar_select %p27_p4, %s1064_s17, %s29_s26  }
  0x59   : > { %p38_p0 = por %p37_p12, %p36_p8  ;;  %p1252_p5 = por %p1463_p3, %p36_p8 }
  0x5a   : > { %s190_s29 = sand.u32 1, %s1064_s17   ;;  %s717_s5 = sshll.u32 %s1068_s18, 10 }
  0x5b   : > { %s685_s30 = sshll.u32 %s190_s29, 6  ;;  %s1261_s8 = scalar_lea.hbm %s1450_s0, %s717_s5 }
  0x5c   : > { %s194_s9 = scalar_lea.vmem [#allocation2], %s685_s30  ;;  %p1263_p10 = pnand %p820_p6, %p38_p0 }
  0x5d   : > { %s201_s11 = sshll.u32 %s194_s9, 4  ;;  %s1269_s25 = scalar_lea.sflag [#allocation3], %s190_s29  ;;  %s1267_s11 = int_to_ptr.vmem [resolvable:$true] %s201_s11 }
  0x5e   : > { %s964_s12 = scalar_lea.hbm %s1261_s8, 1024  ;;  %p966_p9 = pneg %p1263_p10 }
  0x5f   : > { %p965_p7 = scmp.ne.s32.totalorder %s1261_s8, %s964_s12  ;;  %s969_s5 = scalar_lea.hbm %s1450_s0, 4096 }
  0x60   : > { %p970_p1 = scmp.lt.u32.totalorder %s1261_s8, %s1450_s0  ;;  %p971_p2 = scmp.lt.u32.totalorder %s969_s5, %s964_s12 }
  0x61   : > { %p967_p11 = pnand %p966_p9, %p965_p7  ;;  %p973_p8 = scmp.lt.u32.totalorder %s964_s12, %s1261_s8 }
  0x62   : > { %p972_p4 = por %p971_p2, %p970_p1 }
  0x63   : > { %p968_p13 = pneg %p967_p11 }
  0x64   : > { %p974_p12 = por %p973_p8, %p972_p4 }
  0x66   : > { %p975_p6 = pnand %p974_p12, %p968_p13 }
  0x68   : > { %978 = shalt.err (!%p975_p6)
}
  0x69   : > { %s979_s29 = scalar_lea.vmem %s1267_s11, 1024  ;;  %s1075_s7 = smov [#allocation2]  }
  0x6a   : > { %p980_p0 = scmp.ne.s32.totalorder %s1267_s11, %s979_s29  ;;  %s984_s9 = sshll.u32 %s1075_s7, 4  ;;  %s985_s9 = int_to_ptr.vmem [resolvable:$false] %s984_s9 }
  0x6b   : > { %s986_s13 = scalar_lea.vmem %s985_s9, 2048  ;;  %p987_p11 = scmp.lt.s32.totalorder %s1267_s11, %s985_s9 }
  0x6c   : > { %p982_p3 = pnand %p980_p0, %p966_p9  ;;  %p988_p1 = scmp.lt.s32.totalorder %s986_s13, %s979_s29 }
  0x6e   : > { %p983_p7 = pneg %p982_p3  ;;  %p989_p2 = por %p988_p1, %p987_p11 }
  0x70   : > { %p990_p4 = pnand %p989_p2, %p983_p7 }
  0x72   : > { %993 = shalt.err (!%p990_p4)
}
  0x73   : > { %812 = dma.hbm_to_vmem [thread:$0]  (!%p1263_p10), %s1261_s8, 1024, %s1267_s11, %s1269_s25, %s1073_s14, %s1073_s14, %s1074_s20  }
  0x74   : > { %p1466_p9 = scmp.ne.s32.totalorder %s1460_s23, 0 }
  0x75   : > { %s1303_s12 = sand.u32 (!%p1466_p9), 1, %s1060_s16   ;;  %p1467_p13 = scmp.ne.s32.totalorder (!%p1466_p9), %s1458_s21, 0 }
  0x76   : > { %213 = sbr.rel (%p1466_p9) target bundleno = 410 (0x19a), region = 36  ;;  %s689_s26 = sshll.u32 (!%p1466_p9), %s1303_s12, 6 }
  0x77   : > { %s216_s5 = scalar_lea.sflag (!%p1466_p9), [#allocation3], %s1303_s12  ;;  %s1307_s30 = scalar_lea.vmem (!%p1466_p9), [#allocation2], %s689_s26 }
  0x7d   : > { %1039 = dma.done.wait (%p1467_p13), %s216_s5, 1024  }
  0x7e   : > { %1041 = vsyncadd (%p1467_p13), %s216_s5, 4294966272  ;;  %p1468_p10 = scmp.eq.s32.totalorder %s1125_s19, 0 }
  0x80   : > { %1043 = dma.done.wait (%p1468_p10), [#allocation6], 1040   ;;  %p1469_p8 = pmov %p1468_p10 }
  0x82   : > { %1045 = vsyncadd (%p1469_p8), [#allocation6], 4294966256  ;;  %p1470_p12 = pmov %p1469_p8 }
  0x83   : > { %p1471_p6 = pmov %p1469_p8 }
  0x84   : > { %1047 = dma.done.wait (%p1470_p12), [#allocation9], 16  }
  0x85   : > { %1049 = vsyncadd (%p1471_p6), [#allocation9], 4294967280  ;;  %v864_v0 = vld [vmem:[#allocation5] sm:$0xff]   ;;  %v865_v1 = vld [vmem:[#allocation5 + $0x8] sm:$0xff]   ;;  %s693_s21 = sshll.u32 %s1303_s12, 7  ;;  %vm546_vm0 = vcmask 64512  }
  0x86   : > { %735 = vmatprep.subr.bf16.mxu0 %v864_v0  ;;  %767 = vmatprep.subr.bf16.mxu1 %v864_v0  ;;  %v866_v2 = vld [vmem:[#allocation5 + $0x10] sm:$0xff]   ;;  %v867_v3 = vld [vmem:[#allocation5 + $0x18] sm:$0xff]   ;;  %v872_v4 = vld [vmem:[%s1307_s30] sm:$0xff]   ;;  %s1350_s23 = scalar_lea.vmem [#allocation10], %s693_s21  ;;  %s718_s14 = sshll.u32 %s1125_s19, 11 }
  0x87   : > { %736 = vmatpush3.bf16.msra.mxu0 %v864_v0  ;;  %775 = vmatpush3.bf16.msra.mxu1 %v864_v0  ;;  %v873_v5 = vld [vmem:[%s1307_s30 + $0x20] sm:$0xff]   ;;  %v869_v7 = vld [vmem:[#allocation5 + $0x28] sm:$0xff]   ;;  %v870_v8 = vld [vmem:[#allocation5 + $0x30] sm:$0xff]   ;;  %s577_s20 = sshll.u32 %s1350_s23, 4  ;;  %s1393_s11 = scalar_lea.hbm %s1454_s4, %s718_s14  ;;  %s1395_s20 = int_to_ptr.vmem [resolvable:$true] %s577_s20 }
  0x88   : > { %737 = vmatprep.subr.bf16.mxu0 %v865_v1  ;;  %768 = vmatprep.subr.bf16.mxu1 %v865_v1  ;;  %v868_v6 = vld [vmem:[#allocation5 + $0x20] sm:$0xff]   ;;  %v871_v9 = vld [vmem:[#allocation5 + $0x38] sm:$0xff]   ;;  %v874_v10 = vld [vmem:[%s1307_s30 + $0x8] sm:$0xff]   ;;  %s564_s28 = scalar_lea.sflag [#allocation4], %s1303_s12  ;;  %s994_s25 = scalar_lea.vmem %s1395_s20, 2048 }
  0x89   : > { %751 = vmatprep.mubr.bf16.mxu0 %v872_v4  ;;  %759 = vmatprep.mubr.bf16.mxu1 %v873_v5  ;;  %v875_v11 = vld [vmem:[%s1307_s30 + $0x28] sm:$0xff]   ;;  %v876_v12 = vld [vmem:[%s1307_s30 + $0x10] sm:$0xff]   ;;  %v878_v14 = vld [vmem:[%s1307_s30 + $0x18] sm:$0xff]   ;;  %p995_p0 = scmp.ne.s32.totalorder %s1395_s20, %s994_s25  ;;  %s1076_s6 = smov [#allocation10]  }
  0x8a   : > { %v877_v13 = vld [vmem:[%s1307_s30 + $0x30] sm:$0xff]   ;;  %v879_v15 = vld [vmem:[%s1307_s30 + $0x38] sm:$0xff]   ;;  %v1329_v16 = vld [vmem:[#allocation7] ss:$0 sm:$0xff]  ;;  %s998_s29 = sshll.u32 %s1076_s6, 4  ;;  %s999_s29 = int_to_ptr.vmem [resolvable:$false] %s998_s29 }
  0x8b   : > { %738 = vmatpush3.bf16.msra.mxu0 %v865_v1  ;;  %776 = vmatpush3.bf16.msra.mxu1 %v865_v1  ;;  %v1331_v18 = vld [vmem:[#allocation8] ss:$0 sm:$0xff]  ;;  %p996_p3 = pnand %p995_p0, %p1252_p5  ;;  %s1000_s7 = scalar_lea.vmem %s999_s29, 4096 }
  0x8c   : > { %739 = vmatprep.subr.bf16.mxu0 %v866_v2  ;;  %769 = vmatprep.subr.bf16.mxu1 %v866_v2  ;;  %p1001_p11 = scmp.lt.s32.totalorder %s1395_s20, %s999_s29  ;;  %p1002_p1 = scmp.lt.s32.totalorder %s1000_s7, %s994_s25 }
  0x8d   : > { %p997_p7 = pneg %p996_p3 }
  0x8e   : > { %p1003_p2 = por %p1002_p1, %p1001_p11 }
  0x8f   : > { %740 = vmatpush3.bf16.msra.mxu0 %v866_v2  ;;  %777 = vmatpush3.bf16.msra.mxu1 %v866_v2 }
  0x90   : > { %741 = vmatprep.subr.bf16.mxu0 %v867_v3  ;;  %770 = vmatprep.subr.bf16.mxu1 %v867_v3  ;;  %p1004_p4 = pnand %p1003_p2, %p997_p7 }
  0x93   : > { %742 = vmatpush3.bf16.msra.mxu0 %v867_v3  ;;  %778 = vmatpush3.bf16.msra.mxu1 %v867_v3 }
  0x94   : > { %743 = vmatprep.subr.bf16.mxu0 %v868_v6  ;;  %771 = vmatprep.subr.bf16.mxu1 %v868_v6 }
  0x97   : > { %744 = vmatpush3.bf16.msra.mxu0 %v868_v6  ;;  %779 = vmatpush3.bf16.msra.mxu1 %v868_v6 }
  0x98   : > { %745 = vmatprep.subr.bf16.mxu0 %v869_v7  ;;  %772 = vmatprep.subr.bf16.mxu1 %v869_v7 }
  0x9b   : > { %746 = vmatpush3.bf16.msra.mxu0 %v869_v7  ;;  %780 = vmatpush3.bf16.msra.mxu1 %v869_v7 }
  0x9c   : > { %747 = vmatprep.subr.bf16.mxu0 %v870_v8  ;;  %773 = vmatprep.subr.bf16.mxu1 %v870_v8 }
  0x9f   : > { %748 = vmatpush3.bf16.msra.mxu0 %v870_v8  ;;  %781 = vmatpush3.bf16.msra.mxu1 %v870_v8 }
  0xa0   : > { %749 = vmatprep.subr.bf16.mxu0 %v871_v9  ;;  %774 = vmatprep.subr.bf16.mxu1 %v871_v9 }
  0xa3   : > { %750 = vmatpush3.bf16.msra.mxu0 %v871_v9  ;;  %782 = vmatpush3.bf16.msra.mxu1 %v871_v9 }
  0xa6   : > { %752 = vmatmul.mubr.bf16.vlgmr.msra.gmra.mrb[0].mxu0 %v874_v10  ;;  %760 = vmatmul.mubr.bf16.vlgmr.msra.gmra.mrb[0].mxu1 %v875_v11 }
  0xa7   : > { %755 = vmatprep.mubr.bf16.mxu0 %v876_v12  ;;  %763 = vmatprep.mubr.bf16.mxu1 %v877_v13 }
  0xae   : > { %756 = vmatmul.mubr.bf16.gmra.mrb[4].mxu0 %v878_v14  ;;  %764 = vmatmul.mubr.bf16.gmra.mrb[4].mxu1 %v879_v15 }
 0x179   : > { %v753_v17 = vpop.f32.mrb[0].mxu0  ;;  %v761_v19 = vpop.f32.mrb[0].mxu1 }
 0x17a   : > { %v493_v20 = vmul.f32 %v753_v17, %v1329_v16  ;;  %v501_v21 = vmul.f32 %v761_v19, %v1329_v16  ;;  %v421_v22 = vpop.f32.mrb[1].mxu0  ;;  %v453_v23 = vpop.f32.mrb[1].mxu1 }
 0x17b   : > { %v491_v24 = vmul.f32 %v1329_v16, %v421_v22  ;;  %v499_v25 = vmul.f32 %v1329_v16, %v453_v23  ;;  %v754_v26 = vpop.f32.mrb[2].mxu0  ;;  %v762_v27 = vpop.f32.mrb[2].mxu1 }
 0x17c   : > { %v516_v28 = vadd.f32 %v1331_v18, %v493_v20  ;;  %v524_v29 = vadd.f32 %v1331_v18, %v501_v21  ;;  %v494_v30 = vmul.f32 %v754_v26, %v1329_v16  ;;  %v502_v31 = vmul.f32 %v762_v27, %v1329_v16  ;;  %v424_v32 = vpop.f32.mrb[3].mxu0  ;;  %v456_v33 = vpop.f32.mrb[3].mxu1 }
 0x17d   : > { %v514_v34 = vadd.f32 %v1331_v18, %v491_v24  ;;  %v522_v35 = vadd.f32 %v1331_v18, %v499_v25  ;;  %v492_v36 = vmul.f32 %v1329_v16, %v424_v32  ;;  %v500_v37 = vmul.f32 %v1329_v16, %v456_v33 }
 0x17e   : > { %v532_v38 = vmax.f32 %v516_v28, 0.0  ;;  %v540_v39 = vmax.f32 %v524_v29, 0.0  ;;  %v517_v40 = vadd.f32 %v1331_v18, %v494_v30  ;;  %v525_v41 = vadd.f32 %v1331_v18, %v502_v31 }
 0x17f   : > { %v530_v42 = vmax.f32 %v514_v34, 0.0  ;;  %v538_v43 = vmax.f32 %v522_v35, 0.0  ;;  %v515_v44 = vadd.f32 %v1331_v18, %v492_v36  ;;  %v523_v45 = vadd.f32 %v1331_v18, %v500_v37 }
 0x180   : > { %549 = vst.msk [vmem:[%s1350_s23 + $0x10] sm:$0xff] %vm546_vm0, %v532_v38  ;;  %557 = vst.msk [vmem:[%s1350_s23 + $0x50] sm:$0xff] %vm546_vm0, %v540_v39  ;;  %v533_v46 = vmax.f32 %v517_v40, 0.0  ;;  %v541_v47 = vmax.f32 %v525_v41, 0.0 }
 0x181   : > { %547 = vst.msk [vmem:[%s1350_s23] sm:$0xff] %vm546_vm0, %v530_v42  ;;  %555 = vst.msk [vmem:[%s1350_s23 + $0x40] sm:$0xff] %vm546_vm0, %v538_v43  ;;  %v531_v48 = vmax.f32 %v515_v44, 0.0  ;;  %v539_v49 = vmax.f32 %v523_v45, 0.0  ;;  %v757_v50 = vpop.f32.mrb[4].mxu0  ;;  %v765_v51 = vpop.f32.mrb[4].mxu1 }
 0x182   : > { %550 = vst.msk [vmem:[%s1350_s23 + $0x18] sm:$0xff] %vm546_vm0, %v533_v46  ;;  %558 = vst.msk [vmem:[%s1350_s23 + $0x58] sm:$0xff] %vm546_vm0, %v541_v47  ;;  %v497_v52 = vmul.f32 %v757_v50, %v1329_v16  ;;  %v505_v53 = vmul.f32 %v765_v51, %v1329_v16  ;;  %v437_v54 = vpop.f32.mrb[5].mxu0  ;;  %v469_v55 = vpop.f32.mrb[5].mxu1 }
 0x183   : > { %548 = vst.msk [vmem:[%s1350_s23 + $0x8] sm:$0xff] %vm546_vm0, %v531_v48  ;;  %556 = vst.msk [vmem:[%s1350_s23 + $0x48] sm:$0xff] %vm546_vm0, %v539_v49  ;;  %v495_v56 = vmul.f32 %v1329_v16, %v437_v54  ;;  %v503_v57 = vmul.f32 %v1329_v16, %v469_v55  ;;  %v758_v58 = vpop.f32.mrb[6].mxu0  ;;  %v766_v59 = vpop.f32.mrb[6].mxu1 }
 0x184   : > { %v520_v60 = vadd.f32 %v1331_v18, %v497_v52  ;;  %v528_v61 = vadd.f32 %v1331_v18, %v505_v53  ;;  %v498_v62 = vmul.f32 %v758_v58, %v1329_v16  ;;  %v506_v63 = vmul.f32 %v766_v59, %v1329_v16  ;;  %v440_v0 = vpop.f32.mrb[7].mxu0  ;;  %v472_v1 = vpop.f32.mrb[7].mxu1 }
 0x185   : > { %v518_v2 = vadd.f32 %v1331_v18, %v495_v56  ;;  %v526_v3 = vadd.f32 %v1331_v18, %v503_v57  ;;  %v496_v4 = vmul.f32 %v1329_v16, %v440_v0  ;;  %v504_v5 = vmul.f32 %v1329_v16, %v472_v1 }
 0x186   : > { %v536_v6 = vmax.f32 %v520_v60, 0.0  ;;  %v544_v7 = vmax.f32 %v528_v61, 0.0  ;;  %v521_v8 = vadd.f32 %v1331_v18, %v498_v62  ;;  %v529_v9 = vadd.f32 %v1331_v18, %v506_v63 }
 0x187   : > { %v534_v10 = vmax.f32 %v518_v2, 0.0  ;;  %v542_v11 = vmax.f32 %v526_v3, 0.0  ;;  %v519_v12 = vadd.f32 %v1331_v18, %v496_v4  ;;  %v527_v13 = vadd.f32 %v1331_v18, %v504_v5 }
 0x188   : > { %553 = vst.msk [vmem:[%s1350_s23 + $0x30] sm:$0xff] %vm546_vm0, %v536_v6  ;;  %561 = vst.msk [vmem:[%s1350_s23 + $0x70] sm:$0xff] %vm546_vm0, %v544_v7  ;;  %v537_v14 = vmax.f32 %v521_v8, 0.0  ;;  %v545_v15 = vmax.f32 %v529_v9, 0.0 }
 0x189   : > { %551 = vst.msk [vmem:[%s1350_s23 + $0x20] sm:$0xff] %vm546_vm0, %v534_v10  ;;  %559 = vst.msk [vmem:[%s1350_s23 + $0x60] sm:$0xff] %vm546_vm0, %v542_v11  ;;  %v535_v16 = vmax.f32 %v519_v12, 0.0  ;;  %v543_v17 = vmax.f32 %v527_v13, 0.0 }
 0x18a   : > { %554 = vst.msk [vmem:[%s1350_s23 + $0x38] sm:$0xff] %vm546_vm0, %v537_v14  ;;  %562 = vst.msk [vmem:[%s1350_s23 + $0x78] sm:$0xff] %vm546_vm0, %v545_v15 }
 0x18b   : > { %552 = vst.msk [vmem:[%s1350_s23 + $0x28] sm:$0xff] %vm546_vm0, %v535_v16  ;;  %560 = vst.msk [vmem:[%s1350_s23 + $0x68] sm:$0xff] %vm546_vm0, %v543_v17 }
 0x18c   : > { %1007 = shalt.err (!%p1004_p4)
}
 0x18d   : > { %s1008_s9 = scalar_lea.hbm %s1393_s11, 2048  ;;  %s1012_s5 = scalar_lea.hbm %s1454_s4, 8192 }
 0x18e   : > { %p1009_p9 = scmp.ne.s32.totalorder %s1393_s11, %s1008_s9  ;;  %p1013_p8 = scmp.lt.u32.totalorder %s1393_s11, %s1454_s4 }
 0x18f   : > { %p1014_p12 = scmp.lt.u32.totalorder %s1012_s5, %s1008_s9  ;;  %p1016_p0 = scmp.lt.u32.totalorder %s1008_s9, %s1393_s11 }
 0x190   : > { %p1010_p13 = pnand %p1009_p9, %p1252_p5 }
 0x191   : > { %p1015_p6 = por %p1014_p12, %p1013_p8 }
 0x192   : > { %p1011_p10 = pneg %p1010_p13 }
 0x193   : > { %p1017_p3 = por %p1016_p0, %p1015_p6 }
 0x195   : > { %p1018_p7 = pnand %p1017_p3, %p1011_p10 }
 0x197   : > { %1021 = shalt.err (!%p1018_p7)
}
 0x198   : > { %s1077_s23 = smov 128   ;;  %s1078_s14 = smov 8  }
 0x199   : > { %797 = dma.vmem_to_hbm [thread:$0]  (%p1252_p5), %s1395_s20, 2048, %s1393_s11, %s564_s28, %s1077_s23, %s1077_s23, %s1078_s14  }
 0x19a PF: > { %p824_p11 = scmp.ge.s32.totalorder %s1068_s18, 2  ;;  %s592_s19 = sand.u32 1, %s1056_s15  }
 0x19b   : > { %p1472_p1 = scmp.ne.s32.totalorder %s1459_s22, 0  ;;  %s593_s8 = scalar_lea.sflag [#allocation4], %s592_s19 }
 0x19d   : > { %p814_p2 = pnand %p824_p11, %p1472_p1 }
 0x19f   : > { %1051 = dma.done.wait (!%p814_p2), %s593_s8, 2048  }
 0x1a0   : > { %1053 = vsyncadd (!%p814_p2), %s593_s8, 4294965248  ;;  %p19_p4 = scmp.ge.s32.totalorder %s1238_s10, 6   ;;  %s1473_s15 = smov %s1060_s16 }
 0x1a1   : > { %s1474_s16 = smov %s1064_s17  ;;  %s1475_s17 = smov %s1248_s24 }
 0x1a2   : > { %s1476_s18 = smov %s1238_s10  ;;  %21 = sbr.rel (!%p19_p4) target bundleno = 7 (0x7), region = 93 }
 0x1a9   :  { %598 = vsyncpa [#allocation3], 1 }
 0x1aa   :  { %600 = vsyncpa [#allocation3 + $0x1], 1 }
 0x1ab   :  { %601 = vsyncpa [#allocation6], 1 }
 0x1ac   :  { %602 = vsyncpa [#allocation9], 1 }
 0x1ad   :  { %603 = vsyncpa [#allocation4], 1 }
 0x1ae   :  { %605 = vsyncpa [#allocation4 + $0x1], 1 }

// kernel: tpu_custom_call.1
= control target key start
LH: loop header
LB: loop body
LE: loop exit
PB: predicated region body
PF: predicated region fallthrough
CT: control target
= control target key end

     0   :  { %9 = vsyncpa [#allocation3], 0  ;;  %s1450_s0 = inlined_call_operand.hbm [shape: bf16[512,128], index: 0, kind: input, shape index: {}]   ;;  %s1451_s1 = inlined_call_operand.hbm [shape: bf16[128,8], index: 1, kind: input, shape index: {}]   ;;  %s1452_s2 = inlined_call_operand.hbm [shape: f32[1,8], index: 2, kind: input, shape index: {}]   ;;  %s1453_s3 = inlined_call_operand.hbm [shape: f32[1,8], index: 3, kind: input, shape index: {}]   ;;  %s1454_s4 = inlined_call_operand.hbm [shape: f32[512,8], index: 4, kind: output, shape index: {}]  }
   0x1   :  { %11 = vsyncpa [#allocation3 + $0x1], 0 }
   0x2   :  { %12 = vsyncpa [#allocation6], 0 }
   0x3   :  { %13 = vsyncpa [#allocation9], 0 }
   0x4   :  { %14 = vsyncpa [#allocation4], 0 }
   0x5   :  { %16 = vsyncpa [#allocation4 + $0x1], 0  ;;  %s1104_s15 = smov 0   ;;  %s1106_s16 = smov 0  }
   0x6   :  { %s1108_s17 = smov 0   ;;  %s1110_s18 = smov 0  }
   0x7 LB: > { %s1125_s19 = sadd.s32 4294967295, %s1068_s18   ;;  %s679_s20 = sadd.s32 4294967294, %s1068_s18   ;;  %s1068_s18 = sphi %s1110_s18, %s1476_s18   ;;  %s1064_s17 = sphi %s1108_s17, %s1475_s17   ;;  %s1060_s16 = sphi %s1106_s16, %s1474_s16   ;;  %s1056_s15 = sphi %s1104_s15, %s1473_s15  }
   0x8   : > { %p42_p0 = scmp.ne.s32.totalorder %s1060_s16, %s1056_s15  ;;  %p1455_p1 = scmp.eq.s32.totalorder %s1125_s19, 0 }
   0x9   : > { %p135_p3 = scmp.eq.s32.totalorder %s679_s20, 3  ;;  %p680_p5 = scmp.ge.s32.totalorder %s1068_s18, 1 }
   0xa   : > { %p1134_p4 = por %p1455_p1, %p42_p0  ;;  %p142_p7 = scmp.lt.s32.totalorder %s1068_s18, 5 }
   0xb   : > { %p1139_p6 = por %p135_p3, %p42_p0  ;;  %s1070_s24 = smov [#allocation5]  }
   0xc   : > { %s1458_s21 = scalar_select %p1134_p4, 1, 0 }
   0xd   : > { %s1459_s22 = scalar_select %p1139_p6, 1, 0 }
   0xe   : > { %p1144_p8 = pnand %p680_p5, %p142_p7  ;;  %s154_s25 = sshll.u32 %s1070_s24, 4  ;;  %s1148_s25 = int_to_ptr.vmem [resolvable:$true] %s154_s25 }
   0xf   : > { %s1071_s27 = smov [#allocation7]   ;;  %s1072_s29 = smov [#allocation8]  }
  0x10   : > { %s1460_s23 = scalar_select %p1144_p8, 1, 0 }
  0x11   : > { %p799_p9 = pneg %p1144_p8  ;;  %s168_s28 = sshll.u32 %s1071_s27, 4  ;;  %s1158_s28 = int_to_ptr.vmem [resolvable:$true] %s168_s28 }
  0x12   : > { %s1160_s30 = sshll.u32 %s1072_s29, 4  ;;  %s880_s7 = scalar_lea.hbm %s1451_s1, 1024  ;;  %s180_s30 = int_to_ptr.vmem [resolvable:$true] %s1160_s30 }
  0x13   : > { %p1154_p10 = pnand %p799_p9, %p1455_p1  ;;  %p881_p11 = scmp.ne.s32.totalorder %s1451_s1, %s880_s7 }
  0x14   : > { %p887_p3 = scmp.lt.u32.totalorder %s880_s7, %s1451_s1 }
  0x15   : > { %p1170_p12 = pneg %p1154_p10 }
  0x17   : > { %p883_p13 = pnand %p1170_p12, %p881_p11 }
  0x19   : > { %p884_p0 = pneg %p883_p13 }
  0x1b   : > { %p889_p5 = pnand %p887_p3, %p884_p0 }
  0x1d   : > { %892 = shalt.err (!%p889_p5)
}
  0x1e   : > { %s893_s13 = scalar_lea.vmem %s1148_s25, 1024  ;;  %p901_p2 = scmp.lt.s32.totalorder %s1148_s25, %s1148_s25 }
  0x1f   : > { %p894_p7 = scmp.ne.s32.totalorder %s1148_s25, %s893_s13  ;;  %p902_p6 = scmp.lt.s32.totalorder %s893_s13, %s893_s13 }
  0x21   : > { %p896_p9 = pnand %p894_p7, %p1170_p12  ;;  %p903_p11 = por %p902_p6, %p901_p2 }
  0x23   : > { %p897_p1 = pneg %p896_p9 }
  0x25   : > { %p904_p13 = pnand %p903_p11, %p897_p1 }
  0x27   : > { %907 = shalt.err (!%p904_p13)
}
  0x28   : > { %s1073_s14 = smov 64   ;;  %s1074_s20 = smov 4  }
  0x29   : > { %802 = dma.hbm_to_vmem [thread:$0]  (!%p1154_p10), %s1451_s1, 1024, %s1148_s25, [#allocation6], %s1073_s14, %s1073_s14, %s1074_s20  }
  0x2a   : > { %s908_s6 = scalar_lea.hbm %s1452_s2, 16 }
  0x2b   : > { %p909_p1 = scmp.ne.s32.totalorder %s1452_s2, %s908_s6  ;;  %p915_p0 = scmp.lt.u32.totalorder %s908_s6, %s1452_s2 }
  0x2d   : > { %p911_p2 = pnand %p909_p1, %p1170_p12 }
  0x2f   : > { %p912_p6 = pneg %p911_p2 }
  0x31   : > { %p917_p3 = pnand %p915_p0, %p912_p6 }
  0x33   : > { %920 = shalt.err (!%p917_p3)
}
  0x34   : > { %s921_s25 = scalar_lea.vmem %s1158_s28, 16  ;;  %s928_s12 = scalar_lea.vmem %s1158_s28, 32 }
  0x35   : > { %p922_p5 = scmp.ne.s32.totalorder %s1158_s28, %s921_s25  ;;  %p929_p11 = scmp.lt.s32.totalorder %s1158_s28, %s1158_s28 }
  0x36   : > { %p930_p13 = scmp.lt.s32.totalorder %s928_s12, %s921_s25 }
  0x37   : > { %p924_p7 = pnand %p922_p5, %p1170_p12 }
  0x38   : > { %p931_p1 = por %p930_p13, %p929_p11 }
  0x39   : > { %p925_p9 = pneg %p924_p7 }
  0x3b   : > { %p932_p2 = pnand %p931_p1, %p925_p9 }
  0x3d   : > { %935 = shalt.err (!%p932_p2)
}
  0x3e   : > { %805 = dma.hbm_to_vmem [thread:$0]  (!%p1154_p10), %s1452_s2, 16, %s1158_s28, [#allocation6]  }
  0x3f   : > { %s936_s5 = scalar_lea.hbm %s1453_s3, 16 }
  0x40   : > { %p937_p6 = scmp.ne.s32.totalorder %s1453_s3, %s936_s5  ;;  %p943_p5 = scmp.lt.u32.totalorder %s936_s5, %s1453_s3 }
  0x42   : > { %p939_p0 = pnand %p937_p6, %p1170_p12 }
  0x44   : > { %p940_p3 = pneg %p939_p0 }
  0x46   : > { %p945_p7 = pnand %p943_p5, %p940_p3 }
  0x48   : > { %948 = shalt.err (!%p945_p7)
}
  0x49   : > { %s949_s11 = scalar_lea.vmem %s180_s30, 16  ;;  %s956_s28 = scalar_lea.vmem %s180_s30, 32 }
  0x4a   : > { %p950_p9 = scmp.ne.s32.totalorder %s180_s30, %s949_s11  ;;  %p957_p1 = scmp.lt.s32.totalorder %s180_s30, %s180_s30 }
  0x4b   : > { %p958_p2 = scmp.lt.s32.totalorder %s956_s28, %s949_s11 }
  0x4c   : > { %p952_p11 = pnand %p950_p9, %p1170_p12 }
  0x4d   : > { %p959_p4 = por %p958_p2, %p957_p1 }
  0x4e   : > { %p953_p13 = pneg %p952_p11 }
  0x50   : > { %p960_p8 = pnand %p959_p4, %p953_p13 }
  0x52   : > { %963 = shalt.err (!%p960_p8)
}
  0x53   : > { %808 = dma.hbm_to_vmem [thread:$0]  (!%p1154_p10), %s1453_s3, 16, %s180_s30, [#allocation9]  }
  0x54   : > { %s1238_s10 = sadd.s32 1, %s1068_s18   ;;  %s29_s26 = sadd.s32 1, %s1064_s17 }
  0x55   : > { %s26_s13 = ssub.s32 %s1068_s18, %s1238_s10  ;;  %p36_p8 = scmp.ne.s32.totalorder %s1064_s17, %s1060_s16 }
  0x56   : > { %p27_p4 = scmp.eq.s32.totalorder %s26_s13, 0  ;;  %p37_p12 = scmp.eq.s32.totalorder %s1068_s18, 0 }
  0x57   : > { %p820_p6 = scmp.lt.s32.totalorder %s1068_s18, 4  ;;  %p1463_p3 = scmp.eq.s32.totalorder %s1125_s19, 3 }
  0x58   : > { %s1248_s24 = scalar_select %p27_p4, %s1064_s17, %s29_s26  }
  0x59   : > { %p38_p0 = por %p37_p12, %p36_p8  ;;  %p1252_p5 = por %p1463_p3, %p36_p8 }
  0x5a   : > { %s190_s29 = sand.u32 1, %s1064_s17   ;;  %s717_s5 = sshll.u32 %s1068_s18, 10 }
  0x5b   : > { %s685_s30 = sshll.u32 %s190_s29, 6  ;;  %s1261_s8 = scalar_lea.hbm %s1450_s0, %s717_s5 }
  0x5c   : > { %s194_s9 = scalar_lea.vmem [#allocation2], %s685_s30  ;;  %p1263_p10 = pnand %p820_p6, %p38_p0 }
  0x5d   : > { %s201_s11 = sshll.u32 %s194_s9, 4  ;;  %s1269_s25 = scalar_lea.sflag [#allocation3], %s190_s29  ;;  %s1267_s11 = int_to_ptr.vmem [resolvable:$true] %s201_s11 }
  0x5e   : > { %s964_s12 = scalar_lea.hbm %s1261_s8, 1024  ;;  %p966_p9 = pneg %p1263_p10 }
  0x5f   : > { %p965_p7 = scmp.ne.s32.totalorder %s1261_s8, %s964_s12  ;;  %s969_s5 = scalar_lea.hbm %s1450_s0, 4096 }
  0x60   : > { %p970_p1 = scmp.lt.u32.totalorder %s1261_s8, %s1450_s0  ;;  %p971_p2 = scmp.lt.u32.totalorder %s969_s5, %s964_s12 }
  0x61   : > { %p967_p11 = pnand %p966_p9, %p965_p7  ;;  %p973_p8 = scmp.lt.u32.totalorder %s964_s12, %s1261_s8 }
  0x62   : > { %p972_p4 = por %p971_p2, %p970_p1 }
  0x63   : > { %p968_p13 = pneg %p967_p11 }
  0x64   : > { %p974_p12 = por %p973_p8, %p972_p4 }
  0x66   : > { %p975_p6 = pnand %p974_p12, %p968_p13 }
  0x68   : > { %978 = shalt.err (!%p975_p6)
}
  0x69   : > { %s979_s29 = scalar_lea.vmem %s1267_s11, 1024  ;;  %s1075_s7 = smov [#allocation2]  }
  0x6a   : > { %p980_p0 = scmp.ne.s32.totalorder %s1267_s11, %s979_s29  ;;  %s984_s9 = sshll.u32 %s1075_s7, 4  ;;  %s985_s9 = int_to_ptr.vmem [resolvable:$false] %s984_s9 }
  0x6b   : > { %s986_s13 = scalar_lea.vmem %s985_s9, 2048  ;;  %p987_p11 = scmp.lt.s32.totalorder %s1267_s11, %s985_s9 }
  0x6c   : > { %p982_p3 = pnand %p980_p0, %p966_p9  ;;  %p988_p1 = scmp.lt.s32.totalorder %s986_s13, %s979_s29 }
  0x6e   : > { %p983_p7 = pneg %p982_p3  ;;  %p989_p2 = por %p988_p1, %p987_p11 }
  0x70   : > { %p990_p4 = pnand %p989_p2, %p983_p7 }
  0x72   : > { %993 = shalt.err (!%p990_p4)
}
  0x73   : > { %812 = dma.hbm_to_vmem [thread:$0]  (!%p1263_p10), %s1261_s8, 1024, %s1267_s11, %s1269_s25, %s1073_s14, %s1073_s14, %s1074_s20  }
  0x74   : > { %p1466_p9 = scmp.ne.s32.totalorder %s1460_s23, 0 }
  0x75   : > { %s1303_s12 = sand.u32 (!%p1466_p9), 1, %s1060_s16   ;;  %p1467_p13 = scmp.ne.s32.totalorder (!%p1466_p9), %s1458_s21, 0 }
  0x76   : > { %213 = sbr.rel (%p1466_p9) target bundleno = 410 (0x19a), region = 36  ;;  %s689_s26 = sshll.u32 (!%p1466_p9), %s1303_s12, 6 }
  0x77   : > { %s216_s5 = scalar_lea.sflag (!%p1466_p9), [#allocation3], %s1303_s12  ;;  %s1307_s30 = scalar_lea.vmem (!%p1466_p9), [#allocation2], %s689_s26 }
  0x7d   : > { %1039 = dma.done.wait (%p1467_p13), %s216_s5, 1024  }
  0x7e   : > { %1041 = vsyncadd (%p1467_p13), %s216_s5, 4294966272  ;;  %p1468_p10 = scmp.eq.s32.totalorder %s1125_s19, 0 }
  0x80   : > { %1043 = dma.done.wait (%p1468_p10), [#allocation6], 1040   ;;  %p1469_p8 = pmov %p1468_p10 }
  0x82   : > { %1045 = vsyncadd (%p1469_p8), [#allocation6], 4294966256  ;;  %p1470_p12 = pmov %p1469_p8 }
  0x83   : > { %p1471_p6 = pmov %p1469_p8 }
  0x84   : > { %1047 = dma.done.wait (%p1470_p12), [#allocation9], 16  }
  0x85   : > { %1049 = vsyncadd (%p1471_p6), [#allocation9], 4294967280  ;;  %v864_v0 = vld [vmem:[#allocation5] sm:$0xff]   ;;  %v865_v1 = vld [vmem:[#allocation5 + $0x8] sm:$0xff]   ;;  %s693_s21 = sshll.u32 %s1303_s12, 7  ;;  %vm546_vm0 = vcmask 64512  }
  0x86   : > { %735 = vmatprep.subr.bf16.mxu0 %v864_v0  ;;  %767 = vmatprep.subr.bf16.mxu1 %v864_v0  ;;  %v866_v2 = vld [vmem:[#allocation5 + $0x10] sm:$0xff]   ;;  %v867_v3 = vld [vmem:[#allocation5 + $0x18] sm:$0xff]   ;;  %v872_v4 = vld [vmem:[%s1307_s30] sm:$0xff]   ;;  %s1350_s23 = scalar_lea.vmem [#allocation10], %s693_s21  ;;  %s718_s14 = sshll.u32 %s1125_s19, 11 }
  0x87   : > { %736 = vmatpush3.bf16.msra.mxu0 %v864_v0  ;;  %775 = vmatpush3.bf16.msra.mxu1 %v864_v0  ;;  %v873_v5 = vld [vmem:[%s1307_s30 + $0x20] sm:$0xff]   ;;  %v869_v7 = vld [vmem:[#allocation5 + $0x28] sm:$0xff]   ;;  %v870_v8 = vld [vmem:[#allocation5 + $0x30] sm:$0xff]   ;;  %s577_s20 = sshll.u32 %s1350_s23, 4  ;;  %s1393_s11 = scalar_lea.hbm %s1454_s4, %s718_s14  ;;  %s1395_s20 = int_to_ptr.vmem [resolvable:$true] %s577_s20 }
  0x88   : > { %737 = vmatprep.subr.bf16.mxu0 %v865_v1  ;;  %768 = vmatprep.subr.bf16.mxu1 %v865_v1  ;;  %v868_v6 = vld [vmem:[#allocation5 + $0x20] sm:$0xff]   ;;  %v871_v9 = vld [vmem:[#allocation5 + $0x38] sm:$0xff]   ;;  %v874_v10 = vld [vmem:[%s1307_s30 + $0x8] sm:$0xff]   ;;  %s564_s28 = scalar_lea.sflag [#allocation4], %s1303_s12  ;;  %s994_s25 = scalar_lea.vmem %s1395_s20, 2048 }
  0x89   : > { %751 = vmatprep.mubr.bf16.mxu0 %v872_v4  ;;  %759 = vmatprep.mubr.bf16.mxu1 %v873_v5  ;;  %v875_v11 = vld [vmem:[%s1307_s30 + $0x28] sm:$0xff]   ;;  %v876_v12 = vld [vmem:[%s1307_s30 + $0x10] sm:$0xff]   ;;  %v878_v14 = vld [vmem:[%s1307_s30 + $0x18] sm:$0xff]   ;;  %p995_p0 = scmp.ne.s32.totalorder %s1395_s20, %s994_s25  ;;  %s1076_s6 = smov [#allocation10]  }
  0x8a   : > { %v877_v13 = vld [vmem:[%s1307_s30 + $0x30] sm:$0xff]   ;;  %v879_v15 = vld [vmem:[%s1307_s30 + $0x38] sm:$0xff]   ;;  %v1329_v16 = vld [vmem:[#allocation7] ss:$0 sm:$0xff]  ;;  %s998_s29 = sshll.u32 %s1076_s6, 4  ;;  %s999_s29 = int_to_ptr.vmem [resolvable:$false] %s998_s29 }
  0x8b   : > { %738 = vmatpush3.bf16.msra.mxu0 %v865_v1  ;;  %776 = vmatpush3.bf16.msra.mxu1 %v865_v1  ;;  %v1331_v18 = vld [vmem:[#allocation8] ss:$0 sm:$0xff]  ;;  %p996_p3 = pnand %p995_p0, %p1252_p5  ;;  %s1000_s7 = scalar_lea.vmem %s999_s29, 4096 }
  0x8c   : > { %739 = vmatprep.subr.bf16.mxu0 %v866_v2  ;;  %769 = vmatprep.subr.bf16.mxu1 %v866_v2  ;;  %p1001_p11 = scmp.lt.s32.totalorder %s1395_s20, %s999_s29  ;;  %p1002_p1 = scmp.lt.s32.totalorder %s1000_s7, %s994_s25 }
  0x8d   : > { %p997_p7 = pneg %p996_p3 }
  0x8e   : > { %p1003_p2 = por %p1002_p1, %p1001_p11 }
  0x8f   : > { %740 = vmatpush3.bf16.msra.mxu0 %v866_v2  ;;  %777 = vmatpush3.bf16.msra.mxu1 %v866_v2 }
  0x90   : > { %741 = vmatprep.subr.bf16.mxu0 %v867_v3  ;;  %770 = vmatprep.subr.bf16.mxu1 %v867_v3  ;;  %p1004_p4 = pnand %p1003_p2, %p997_p7 }
  0x93   : > { %742 = vmatpush3.bf16.msra.mxu0 %v867_v3  ;;  %778 = vmatpush3.bf16.msra.mxu1 %v867_v3 }
  0x94   : > { %743 = vmatprep.subr.bf16.mxu0 %v868_v6  ;;  %771 = vmatprep.subr.bf16.mxu1 %v868_v6 }
  0x97   : > { %744 = vmatpush3.bf16.msra.mxu0 %v868_v6  ;;  %779 = vmatpush3.bf16.msra.mxu1 %v868_v6 }
  0x98   : > { %745 = vmatprep.subr.bf16.mxu0 %v869_v7  ;;  %772 = vmatprep.subr.bf16.mxu1 %v869_v7 }
  0x9b   : > { %746 = vmatpush3.bf16.msra.mxu0 %v869_v7  ;;  %780 = vmatpush3.bf16.msra.mxu1 %v869_v7 }
  0x9c   : > { %747 = vmatprep.subr.bf16.mxu0 %v870_v8  ;;  %773 = vmatprep.subr.bf16.mxu1 %v870_v8 }
  0x9f   : > { %748 = vmatpush3.bf16.msra.mxu0 %v870_v8  ;;  %781 = vmatpush3.bf16.msra.mxu1 %v870_v8 }
  0xa0   : > { %749 = vmatprep.subr.bf16.mxu0 %v871_v9  ;;  %774 = vmatprep.subr.bf16.mxu1 %v871_v9 }
  0xa3   : > { %750 = vmatpush3.bf16.msra.mxu0 %v871_v9  ;;  %782 = vmatpush3.bf16.msra.mxu1 %v871_v9 }
  0xa6   : > { %752 = vmatmul.mubr.bf16.vlgmr.msra.gmra.mrb[0].mxu0 %v874_v10  ;;  %760 = vmatmul.mubr.bf16.vlgmr.msra.gmra.mrb[0].mxu1 %v875_v11 }
  0xa7   : > { %755 = vmatprep.mubr.bf16.mxu0 %v876_v12  ;;  %763 = vmatprep.mubr.bf16.mxu1 %v877_v13 }
  0xae   : > { %756 = vmatmul.mubr.bf16.gmra.mrb[4].mxu0 %v878_v14  ;;  %764 = vmatmul.mubr.bf16.gmra.mrb[4].mxu1 %v879_v15 }
 0x179   : > { %v753_v17 = vpop.f32.mrb[0].mxu0  ;;  %v761_v19 = vpop.f32.mrb[0].mxu1 }
 0x17a   : > { %v493_v20 = vmul.f32 %v753_v17, %v1329_v16  ;;  %v501_v21 = vmul.f32 %v761_v19, %v1329_v16  ;;  %v421_v22 = vpop.f32.mrb[1].mxu0  ;;  %v453_v23 = vpop.f32.mrb[1].mxu1 }
 0x17b   : > { %v491_v24 = vmul.f32 %v1329_v16, %v421_v22  ;;  %v499_v25 = vmul.f32 %v1329_v16, %v453_v23  ;;  %v754_v26 = vpop.f32.mrb[2].mxu0  ;;  %v762_v27 = vpop.f32.mrb[2].mxu1 }
 0x17c   : > { %v516_v28 = vadd.f32 %v1331_v18, %v493_v20  ;;  %v524_v29 = vadd.f32 %v1331_v18, %v501_v21  ;;  %v494_v30 = vmul.f32 %v754_v26, %v1329_v16  ;;  %v502_v31 = vmul.f32 %v762_v27, %v1329_v16  ;;  %v424_v32 = vpop.f32.mrb[3].mxu0  ;;  %v456_v33 = vpop.f32.mrb[3].mxu1 }
 0x17d   : > { %v514_v34 = vadd.f32 %v1331_v18, %v491_v24  ;;  %v522_v35 = vadd.f32 %v1331_v18, %v499_v25  ;;  %v492_v36 = vmul.f32 %v1329_v16, %v424_v32  ;;  %v500_v37 = vmul.f32 %v1329_v16, %v456_v33 }
 0x17e   : > { %v532_v38 = vmax.f32 %v516_v28, 0.0  ;;  %v540_v39 = vmax.f32 %v524_v29, 0.0  ;;  %v517_v40 = vadd.f32 %v1331_v18, %v494_v30  ;;  %v525_v41 = vadd.f32 %v1331_v18, %v502_v31 }
 0x17f   : > { %v530_v42 = vmax.f32 %v514_v34, 0.0  ;;  %v538_v43 = vmax.f32 %v522_v35, 0.0  ;;  %v515_v44 = vadd.f32 %v1331_v18, %v492_v36  ;;  %v523_v45 = vadd.f32 %v1331_v18, %v500_v37 }
 0x180   : > { %549 = vst.msk [vmem:[%s1350_s23 + $0x10] sm:$0xff] %vm546_vm0, %v532_v38  ;;  %557 = vst.msk [vmem:[%s1350_s23 + $0x50] sm:$0xff] %vm546_vm0, %v540_v39  ;;  %v533_v46 = vmax.f32 %v517_v40, 0.0  ;;  %v541_v47 = vmax.f32 %v525_v41, 0.0 }
 0x181   : > { %547 = vst.msk [vmem:[%s1350_s23] sm:$0xff] %vm546_vm0, %v530_v42  ;;  %555 = vst.msk [vmem:[%s1350_s23 + $0x40] sm:$0xff] %vm546_vm0, %v538_v43  ;;  %v531_v48 = vmax.f32 %v515_v44, 0.0  ;;  %v539_v49 = vmax.f32 %v523_v45, 0.0  ;;  %v757_v50 = vpop.f32.mrb[4].mxu0  ;;  %v765_v51 = vpop.f32.mrb[4].mxu1 }
 0x182   : > { %550 = vst.msk [vmem:[%s1350_s23 + $0x18] sm:$0xff] %vm546_vm0, %v533_v46  ;;  %558 = vst.msk [vmem:[%s1350_s23 + $0x58] sm:$0xff] %vm546_vm0, %v541_v47  ;;  %v497_v52 = vmul.f32 %v757_v50, %v1329_v16  ;;  %v505_v53 = vmul.f32 %v765_v51, %v1329_v16  ;;  %v437_v54 = vpop.f32.mrb[5].mxu0  ;;  %v469_v55 = vpop.f32.mrb[5].mxu1 }
 0x183   : > { %548 = vst.msk [vmem:[%s1350_s23 + $0x8] sm:$0xff] %vm546_vm0, %v531_v48  ;;  %556 = vst.msk [vmem:[%s1350_s23 + $0x48] sm:$0xff] %vm546_vm0, %v539_v49  ;;  %v495_v56 = vmul.f32 %v1329_v16, %v437_v54  ;;  %v503_v57 = vmul.f32 %v1329_v16, %v469_v55  ;;  %v758_v58 = vpop.f32.mrb[6].mxu0  ;;  %v766_v59 = vpop.f32.mrb[6].mxu1 }
 0x184   : > { %v520_v60 = vadd.f32 %v1331_v18, %v497_v52  ;;  %v528_v61 = vadd.f32 %v1331_v18, %v505_v53  ;;  %v498_v62 = vmul.f32 %v758_v58, %v1329_v16  ;;  %v506_v63 = vmul.f32 %v766_v59, %v1329_v16  ;;  %v440_v0 = vpop.f32.mrb[7].mxu0  ;;  %v472_v1 = vpop.f32.mrb[7].mxu1 }
 0x185   : > { %v518_v2 = vadd.f32 %v1331_v18, %v495_v56  ;;  %v526_v3 = vadd.f32 %v1331_v18, %v503_v57  ;;  %v496_v4 = vmul.f32 %v1329_v16, %v440_v0  ;;  %v504_v5 = vmul.f32 %v1329_v16, %v472_v1 }
 0x186   : > { %v536_v6 = vmax.f32 %v520_v60, 0.0  ;;  %v544_v7 = vmax.f32 %v528_v61, 0.0  ;;  %v521_v8 = vadd.f32 %v1331_v18, %v498_v62  ;;  %v529_v9 = vadd.f32 %v1331_v18, %v506_v63 }
 0x187   : > { %v534_v10 = vmax.f32 %v518_v2, 0.0  ;;  %v542_v11 = vmax.f32 %v526_v3, 0.0  ;;  %v519_v12 = vadd.f32 %v1331_v18, %v496_v4  ;;  %v527_v13 = vadd.f32 %v1331_v18, %v504_v5 }
 0x188   : > { %553 = vst.msk [vmem:[%s1350_s23 + $0x30] sm:$0xff] %vm546_vm0, %v536_v6  ;;  %561 = vst.msk [vmem:[%s1350_s23 + $0x70] sm:$0xff] %vm546_vm0, %v544_v7  ;;  %v537_v14 = vmax.f32 %v521_v8, 0.0  ;;  %v545_v15 = vmax.f32 %v529_v9, 0.0 }
 0x189   : > { %551 = vst.msk [vmem:[%s1350_s23 + $0x20] sm:$0xff] %vm546_vm0, %v534_v10  ;;  %559 = vst.msk [vmem:[%s1350_s23 + $0x60] sm:$0xff] %vm546_vm0, %v542_v11  ;;  %v535_v16 = vmax.f32 %v519_v12, 0.0  ;;  %v543_v17 = vmax.f32 %v527_v13, 0.0 }
 0x18a   : > { %554 = vst.msk [vmem:[%s1350_s23 + $0x38] sm:$0xff] %vm546_vm0, %v537_v14  ;;  %562 = vst.msk [vmem:[%s1350_s23 + $0x78] sm:$0xff] %vm546_vm0, %v545_v15 }
 0x18b   : > { %552 = vst.msk [vmem:[%s1350_s23 + $0x28] sm:$0xff] %vm546_vm0, %v535_v16  ;;  %560 = vst.msk [vmem:[%s1350_s23 + $0x68] sm:$0xff] %vm546_vm0, %v543_v17 }
 0x18c   : > { %1007 = shalt.err (!%p1004_p4)
}
 0x18d   : > { %s1008_s9 = scalar_lea.hbm %s1393_s11, 2048  ;;  %s1012_s5 = scalar_lea.hbm %s1454_s4, 8192 }
 0x18e   : > { %p1009_p9 = scmp.ne.s32.totalorder %s1393_s11, %s1008_s9  ;;  %p1013_p8 = scmp.lt.u32.totalorder %s1393_s11, %s1454_s4 }
 0x18f   : > { %p1014_p12 = scmp.lt.u32.totalorder %s1012_s5, %s1008_s9  ;;  %p1016_p0 = scmp.lt.u32.totalorder %s1008_s9, %s1393_s11 }
 0x190   : > { %p1010_p13 = pnand %p1009_p9, %p1252_p5 }
 0x191   : > { %p1015_p6 = por %p1014_p12, %p1013_p8 }
 0x192   : > { %p1011_p10 = pneg %p1010_p13 }
 0x193   : > { %p1017_p3 = por %p1016_p0, %p1015_p6 }
 0x195   : > { %p1018_p7 = pnand %p1017_p3, %p1011_p10 }
 0x197   : > { %1021 = shalt.err (!%p1018_p7)
}
 0x198   : > { %s1077_s23 = smov 128   ;;  %s1078_s14 = smov 8  }
 0x199   : > { %797 = dma.vmem_to_hbm [thread:$0]  (%p1252_p5), %s1395_s20, 2048, %s1393_s11, %s564_s28, %s1077_s23, %s1077_s23, %s1078_s14  }
 0x19a PF: > { %p824_p11 = scmp.ge.s32.totalorder %s1068_s18, 2  ;;  %s592_s19 = sand.u32 1, %s1056_s15  }
 0x19b   : > { %p1472_p1 = scmp.ne.s32.totalorder %s1459_s22, 0  ;;  %s593_s8 = scalar_lea.sflag [#allocation4], %s592_s19 }
 0x19d   : > { %p814_p2 = pnand %p824_p11, %p1472_p1 }
 0x19f   : > { %1051 = dma.done.wait (!%p814_p2), %s593_s8, 2048  }
 0x1a0   : > { %1053 = vsyncadd (!%p814_p2), %s593_s8, 4294965248  ;;  %p19_p4 = scmp.ge.s32.totalorder %s1238_s10, 6   ;;  %s1473_s15 = smov %s1060_s16 }
 0x1a1   : > { %s1474_s16 = smov %s1064_s17  ;;  %s1475_s17 = smov %s1248_s24 }
 0x1a2   : > { %s1476_s18 = smov %s1238_s10  ;;  %21 = sbr.rel (!%p19_p4) target bundleno = 7 (0x7), region = 93 }
 0x1a9   :  { %598 = vsyncpa [#allocation3], 1 }
 0x1aa   :  { %600 = vsyncpa [#allocation3 + $0x1], 1 }
 0x1ab   :  { %601 = vsyncpa [#allocation6], 1 }
 0x1ac   :  { %602 = vsyncpa [#allocation9], 1 }
 0x1ad   :  { %603 = vsyncpa [#allocation4], 1 }
 0x1ae   :  { %605 = vsyncpa [#allocation4 + $0x1], 1 }

</bundles_post_ra>
